<compile_context>
chip_gen: v7x
topology: tpu7x:2x2x1
jax: 0.10.0
libtpu: 0.0.40
codegen_flags: <defaults>
</compile_context>

<pallas_src>
import functools

import jax
import jax.numpy as jnp
from jax.experimental import pallas as pl
from jax.experimental.pallas import tpu as pltpu


def _relu_kernel(x_ref, o_ref):
    # One VPU max per vreg; the binding resource is the DMA/HBM path.
    o_ref[...] = jnp.maximum(x_ref[...], 0)


# Below this, a standalone pallas_call (dedicated HBM round trip + launch /
# grid-setup overhead) loses to letting XLA fuse the ReLU into its neighbours.
_MIN_PALLAS_BYTES = 512 * 1024


@functools.lru_cache(maxsize=None)
def _chip_config():
    """Per-generation tuning: block size, explicit VMEM limit, multi-TC flag."""
    kind = ""
    try:
        kind = jax.devices()[0].device_kind.lower()
    except Exception:
        pass

    vmem_cap = None
    try:  # best-effort hardware query; fine if unavailable here
        vmem_cap = getattr(pltpu.get_tpu_info(), "vmem_capacity_bytes", None)
    except Exception:
        pass

    if "v7" in kind:
        # 64 MiB physical VMEM per TC, ~3.2 TB/s HBM, 2 TensorCores.
        cfg = {"block_bytes": 6 << 20, "vmem_limit": 30 << 20, "multi_core": True}
    elif "v6" in kind or "v5p" in kind:
        # 128 MiB physical VMEM, ~1.4 TB/s HBM.
        cfg = {"block_bytes": 8 << 20, "vmem_limit": 64 << 20, "multi_core": False}
    elif "v5" in kind:
        # v5e: ~0.8 TB/s HBM; must raise the 16 MiB scoped default for 4 MiB blocks
        # (footprint = 4x block with double-buffered in + out).
        cfg = {"block_bytes": 4 << 20, "vmem_limit": 32 << 20, "multi_core": False}
    else:
        # Unknown / older chip: conservative block, default scoped limit.
        cfg = {"block_bytes": 2 << 20, "vmem_limit": None, "multi_core": False}

    if vmem_cap:
        cfg["block_bytes"] = min(cfg["block_bytes"], max(1 << 20, vmem_cap // 8))
        if cfg["vmem_limit"] is not None:
            cfg["vmem_limit"] = min(cfg["vmem_limit"], vmem_cap)
    return cfg


def _row_tile(rows, lane, itemsize, block_bytes, want_multi_step):
    """Row tile in multiples of 32 sublanes (covers f32/bf16/int8 packing)."""
    max_rows = (block_bytes // (lane * itemsize) // 32) * 32
    max_rows = max(32, max_rows)
    if rows > max_rows:
        return max_rows
    if want_multi_step and rows >= 64:
        # Split into >=2 blocks so both v7x TensorCores get work even for
        # mid-size tensors that would otherwise compile to grid=(1,).
        return max(32, (((rows + 1) // 2 + 31) // 32) * 32)
    return rows  # full extent: always a legal block shape


def relu_pallas(x: jax.Array, *, inplace: bool = False,
                min_pallas_bytes: int | None = None,
                target_block_bytes: int | None = None) -> jax.Array:
    """Elementwise ReLU over an arbitrarily-shaped array via a tiled Pallas kernel."""
    total = x.size
    if total == 0:
        return x

    itemsize = x.dtype.itemsize
    nbytes = total * itemsize
    threshold = _MIN_PALLAS_BYTES if min_pallas_bytes is None else min_pallas_bytes

    # Small tensors: let XLA fuse.  Ragged tensors (not divisible by 128):
    # avoid pad + slice, each of which is a full extra HBM pass.
    if nbytes < threshold or total % 128 != 0:
        return jnp.maximum(x, 0).astype(x.dtype)

    cfg = _chip_config()
    block_bytes = cfg["block_bytes"] if target_block_bytes is None else target_block_bytes

    # Widest lane-dense last dim that divides the element count -> wide,
    # unmasked vector stores over a single contiguous buffer (no padding).
    lane = 128
    for cand in (1024, 512, 256):
        if total % cand == 0:
            lane = cand
            break

    rows = total // lane
    x2d = x.reshape(rows, lane)  # free reshape of a contiguous buffer

    tile_r = _row_tile(rows, lane, itemsize, block_bytes, cfg["multi_core"])
    grid = (pl.cdiv(rows, tile_r),)  # partial last block masked by Pallas

    out2d = pl.pallas_call(
        _relu_kernel,
        out_shape=jax.ShapeDtypeStruct((rows, lane), x.dtype),
        grid=grid,
        in_specs=[pl.BlockSpec((tile_r, lane), lambda i: (i, 0))],
        out_specs=pl.BlockSpec((tile_r, lane), lambda i: (i, 0)),
        compiler_params=pltpu.CompilerParams(
            dimension_semantics=("parallel",),
            vmem_limit_bytes=cfg["vmem_limit"],
        ),
        # nn.ReLU(inplace=True): map onto buffer aliasing.  Footprint only --
        # the caller must donate the input, otherwise XLA inserts a copy.
        input_output_aliases=({0: 0} if inplace else {}),
    )(x2d)

    return out2d.reshape(x.shape)


def _check(x, **kw):
    y = jax.block_until_ready(relu_pallas(x, **kw))
    ref = jnp.maximum(x, 0).astype(x.dtype)
    assert y.shape == x.shape and y.dtype == x.dtype
    assert jnp.array_equal(y, ref), "mismatch vs jnp reference"


if __name__ == "__main__":
    key = jax.random.PRNGKey(0)
    k0, k1, k2, k3, k4 = jax.random.split(key, 5)

    # Primary: small NCHW-like activation -> small-tensor bypass (fused path).
    _check(jax.random.normal(k0, (2, 4, 16, 16), dtype=jnp.float32))

    # Force the Pallas path on a small bf16 tensor: full-extent single block,
    # also exercises input_output_aliases (inplace) compile path.
    _check(jax.random.normal(k1, (2, 8, 32, 32), dtype=jnp.bfloat16),
           min_pallas_bytes=0, inplace=True)

    # Medium f32 tensor on the default per-chip tiling (>=2 grid steps on v7x).
    _check(jax.random.normal(k2, (8, 128, 1024), dtype=jnp.float32),
           min_pallas_bytes=0)

    # Tiny forced block size -> multi-step grid with a partial, masked last block.
    _check(jax.random.normal(k3, (4, 100, 1280), dtype=jnp.float32),
           min_pallas_bytes=0, target_block_bytes=64 * 1024)

    # Ragged element count -> single fused jnp.maximum pass (no pad/slice).
    _check(jax.random.normal(k4, (3, 5, 7), dtype=jnp.float32))

    print("KERNEL_OK")
</pallas_src>

<mosaic_0001>
module attributes {stable_mosaic.version = 11 : i64} {
  func.func @_relu_kernel(%arg0: i32, %arg1: memref<16x1024xbf16, #tpu.memory_space<vmem>>, %arg2: memref<16x1024xbf16, #tpu.memory_space<vmem>>) attributes {dimension_semantics = [#tpu.dimension_semantics<parallel>], iteration_bounds = array<i64: 1>, scalar_prefetch = 0 : i64, scratch_operands = 0 : i64, tpu.core_type = #tpu.core_type<tc>, window_params = [{transform_indices = @transform_0, window_bounds = array<i64: 16, 1024>}, {transform_indices = @transform_1, window_bounds = array<i64: 16, 1024>}]} {
    %c0 = arith.constant 0 : index
    %c0_0 = arith.constant 0 : index
    %0 = vector.load %arg1[%c0, %c0_0] : memref<16x1024xbf16, #tpu.memory_space<vmem>>, vector<16x1024xbf16>
    %cst = arith.constant 0.000000e+00 : bf16
    %1 = vector.broadcast %cst : bf16 to vector<16x1024xbf16>
    %2 = arith.maximumf %0, %1 : vector<16x1024xbf16>
    %c0_1 = arith.constant 0 : index
    %c0_2 = arith.constant 0 : index
    %3 = vector.load %arg2[%c0_1, %c0_2] : memref<16x1024xbf16, #tpu.memory_space<vmem>>, vector<16x1024xbf16>
    tpu.vector_store %arg2[%c0_1, %c0_2], %2 {strides = array<i32>} : memref<16x1024xbf16, #tpu.memory_space<vmem>>, vector<16x1024xbf16>,
    return
  }
  func.func @transform_0(%arg0: i32) -> (i32, i32) {
    %c0_i32 = arith.constant 0 : i32
    %c0_i32_0 = arith.constant 0 : i32
    return %arg0, %c0_i32 : i32, i32
  }
  func.func @transform_1(%arg0: i32) -> (i32, i32) {
    %c0_i32 = arith.constant 0 : i32
    %c0_i32_0 = arith.constant 0 : i32
    return %arg0, %c0_i32 : i32, i32
  }
}

</mosaic_0001>

<bundles_post_ra>
// kernel: tpu_custom_call.1
= control target key start
LH: loop header
LB: loop body
LE: loop exit
PB: predicated region body
PF: predicated region fallthrough
CT: control target
= control target key end

     0   :  { %6 = vsyncpa [#allocation3], 0  ;;  %s163_s0 = inlined_call_operand.hbm [shape: bf16[16,1024], index: 0, kind: input, shape index: {}, may-alias: {0,1}]   ;;  %s164_s1 = inlined_call_operand.hbm [shape: bf16[16,1024], index: 1, kind: output, shape index: {}, may-alias: {0,1}]  }
   0x1   :  { %7 = vsyncpa [#allocation4], 0  ;;  %s118_s6 = smov [#allocation2]   ;;  %s70_s10 = scalar_lea.hbm %s163_s0, 1024 }
   0x2   :  { %s13_s7 = sshll.u32 %s118_s6, 4  ;;  %p71_p0 = scmp.ne.s32.totalorder %s163_s0, %s70_s10  ;;  %s14_s7 = int_to_ptr.vmem [resolvable:$true] %s13_s7 }
   0x3   :  { %p74_p1 = scmp.lt.u32.totalorder %s70_s10, %s163_s0 }
   0x5   :  { %p76_p2 = pnand %p74_p1, %p71_p0 }
   0x7   :  { %79 = shalt.err (!%p76_p2)
}
   0x8   :  { %s80_s15 = scalar_lea.vmem %s14_s7, 1024  ;;  %p85_p4 = scmp.lt.s32.totalorder %s14_s7, %s14_s7 }
   0x9   :  { %p81_p3 = scmp.ne.s32.totalorder %s14_s7, %s80_s15  ;;  %p86_p5 = scmp.lt.s32.totalorder %s80_s15, %s80_s15 }
   0xb   :  { %p87_p6 = por %p86_p5, %p85_p4 }
   0xd   :  { %p88_p7 = pnand %p87_p6, %p81_p3 }
   0xf   :  { %91 = shalt.err (!%p88_p7)
}
  0x10   :  { %s119_s16 = smov 512   ;;  %s120_s17 = smov 32  }
  0x11   :  { %19 = dma.hbm_to_vmem [thread:$0]  %s163_s0, 1024, %s14_s7, [#allocation3], %s119_s16, %s119_s16, %s120_s17  }
  0x12   :  { %114 = dma.done.wait [#allocation3], 1024  }
  0x13   :  { %115 = vsyncadd [#allocation3], 4294966272  ;;  %v24_v0 = vld [vmem:[#allocation2] sm:$0xff]  ;;  %v25_v1 = vld [vmem:[#allocation2 + $0x8] sm:$0xff]  ;;  %s121_s20 = smov [#allocation5]   ;;  %v122_v3 = vmov 0  }
  0x14   :  { %v26_v2 = vld [vmem:[#allocation2 + $0x10] sm:$0xff]  ;;  %s53_s21 = sshll.u32 %s121_s20, 4  ;;  %v32_v4 = vmax.bf16 %v122_v3, %v24_v0  ;;  %v33_v5 = vmax.bf16 %v122_v3, %v25_v1  ;;  %v27_v7 = vld [vmem:[#allocation2 + $0x18] sm:$0xff]  ;;  %v28_v8 = vld [vmem:[#allocation2 + $0x20] sm:$0xff]  ;;  %s54_s21 = int_to_ptr.vmem [resolvable:$true] %s53_s21 }
  0x15   :  { %v34_v6 = vmax.bf16 %v122_v3, %v26_v2  ;;  %v29_v9 = vld [vmem:[#allocation2 + $0x28] sm:$0xff]  ;;  %v35_v10 = vmax.bf16 %v122_v3, %v27_v7  ;;  %v36_v11 = vmax.bf16 %v122_v3, %v28_v8  ;;  %v30_v13 = vld [vmem:[#allocation2 + $0x30] sm:$0xff]  ;;  %v31_v14 = vld [vmem:[#allocation2 + $0x38] sm:$0xff]  ;;  %s92_s0 = scalar_lea.vmem %s54_s21, 1024  ;;  %p97_p9 = scmp.lt.s32.totalorder %s54_s21, %s54_s21 }
  0x16   :  { %v37_v12 = vmax.bf16 %v122_v3, %v29_v9  ;;  %40 = vst [vmem:[#allocation5] sm:$0xff] %v32_v4  ;;  %41 = vst [vmem:[#allocation5 + $0x8] sm:$0xff] %v33_v5  ;;  %v38_v15 = vmax.bf16 %v122_v3, %v30_v13  ;;  %v39_v16 = vmax.bf16 %v122_v3, %v31_v14  ;;  %p93_p8 = scmp.ne.s32.totalorder %s54_s21, %s92_s0  ;;  %p98_p10 = scmp.lt.s32.totalorder %s92_s0, %s92_s0 }
  0x17   :  { %42 = vst [vmem:[#allocation5 + $0x10] sm:$0xff] %v34_v6  ;;  %43 = vst [vmem:[#allocation5 + $0x18] sm:$0xff] %v35_v10 }
  0x18   :  { %44 = vst [vmem:[#allocation5 + $0x20] sm:$0xff] %v36_v11  ;;  %45 = vst [vmem:[#allocation5 + $0x28] sm:$0xff] %v37_v12  ;;  %p99_p11 = por %p98_p10, %p97_p9 }
  0x19   :  { %46 = vst [vmem:[#allocation5 + $0x30] sm:$0xff] %v38_v15  ;;  %47 = vst [vmem:[#allocation5 + $0x38] sm:$0xff] %v39_v16 }
  0x1a   :  { %p100_p12 = pnand %p99_p11, %p93_p8 }
  0x1c   :  { %103 = shalt.err (!%p100_p12)
}
  0x1d   :  { %s104_s24 = scalar_lea.hbm %s164_s1, 1024 }
  0x1e   :  { %p105_p13 = scmp.ne.s32.totalorder %s164_s1, %s104_s24  ;;  %p108_p0 = scmp.lt.u32.totalorder %s104_s24, %s164_s1 }
  0x20   :  { %p110_p1 = pnand %p108_p0, %p105_p13 }
  0x22   :  { %113 = shalt.err (!%p110_p1)
}
  0x23   :  { %59 = dma.vmem_to_hbm [thread:$0]  %s54_s21, 1024, %s164_s1, [#allocation4], %s119_s16, %s119_s16, %s120_s17  }
  0x24   :  { %116 = dma.done.wait [#allocation4], 1024  }
  0x25   :  { %117 = vsyncadd [#allocation4], 4294966272 }
  0x26   :  { %63 = vsyncpa [#allocation3], 1 }
  0x27   :  { %64 = vsyncpa [#allocation4], 1 }

</bundles_post_ra>
